<compile_context>
chip_gen: v5e
topology: v5e:2x2
jax: 0.10.0
libtpu: 0.0.40
codegen_flags: <defaults>
</compile_context>

<pallas_src>
import math

import jax
import jax.numpy as jnp
from jax.experimental import pallas as pl
from jax.experimental.pallas import tpu as pltpu  # noqa: F401  (TPU backend)

# ----------------------------- model config ---------------------------------
D_MODEL = 32
NUM_HEADS = 4
HEAD_DIM = D_MODEL // NUM_HEADS
D_HIDDEN = 64
SEQ = 8
BATCH = 2
LN_EPS = 1e-12
NEG_INF = -1e9


def _layer_norm(h, gamma, beta):
    mu = jnp.mean(h, axis=-1, keepdims=True)
    var = jnp.mean((h - mu) ** 2, axis=-1, keepdims=True)
    return (h - mu) * jax.lax.rsqrt(var + LN_EPS) * gamma + beta


# ------------------------------ Pallas kernel --------------------------------
def _encoder_layer_kernel(x_ref, valid_ref,
                          wq_ref, bq_ref, wk_ref, bk_ref, wv_ref, bv_ref,
                          wo_ref, bo_ref,
                          g1_ref, be1_ref,
                          w1_ref, bf1_ref, w2_ref, bf2_ref,
                          g2_ref, be2_ref,
                          o_ref):
    """Fused EncoderLayer forward for the whole (B, S, D) batch in VMEM."""
    x = x_ref[...]                                   # (B, S, D)
    B, S, D = x.shape
    x2 = x.reshape(B * S, D)                         # lane dim D stays minor

    # --- QKV projections: whole batch, one MXU pass each ----------------------
    q = jnp.dot(x2, wq_ref[...], preferred_element_type=jnp.float32) + bq_ref[0]
    k = jnp.dot(x2, wk_ref[...], preferred_element_type=jnp.float32) + bk_ref[0]
    v = jnp.dot(x2, wv_ref[...], preferred_element_type=jnp.float32) + bv_ref[0]

    # --- additive key-padding mask built in-kernel ----------------------------
    mask_add = jnp.where(valid_ref[...] > 0.5, 0.0, NEG_INF)        # (B, S)
    mask_add = mask_add[:, None, :]                                  # (B, 1, S)

    wo = wo_ref[...]
    scale = 1.0 / math.sqrt(HEAD_DIM)
    attn = jnp.zeros((B * S, D), jnp.float32)
    for h in range(NUM_HEADS):               # static unroll; each step batched over B
        lo = h * HEAD_DIM
        qh = q[:, lo:lo + HEAD_DIM].reshape(B, S, HEAD_DIM)
        kh = k[:, lo:lo + HEAD_DIM].reshape(B, S, HEAD_DIM)
        vh = v[:, lo:lo + HEAD_DIM].reshape(B, S, HEAD_DIM)
        s = jnp.einsum('bqd,bkd->bqk', qh, kh,
                       preferred_element_type=jnp.float32) * scale + mask_add
        s = s - jnp.max(s, axis=-1, keepdims=True)
        p = jnp.exp(s)
        p = p * pl.reciprocal(jnp.sum(p, axis=-1, keepdims=True), approx=True)
        ctx = jnp.einsum('bqk,bkd->bqd', p, vh,
                         preferred_element_type=jnp.float32)         # (B, S, Hd)
        # fold the head-concat into the output projection
        attn = attn + jnp.dot(ctx.reshape(B * S, HEAD_DIM),
                              wo[lo:lo + HEAD_DIM, :],
                              preferred_element_type=jnp.float32)
    attn = attn + bo_ref[0]

    # --- residual + LayerNorm 1 (dropout = identity) ---------------------------
    h1 = _layer_norm(x2 + attn, g1_ref[0], be1_ref[0])

    # --- feed forward: Linear -> ReLU -> Linear --------------------------------
    f = jnp.dot(h1, w1_ref[...], preferred_element_type=jnp.float32) + bf1_ref[0]
    f = jnp.maximum(f, 0.0)
    f = jnp.dot(f, w2_ref[...], preferred_element_type=jnp.float32) + bf2_ref[0]

    # --- residual + LayerNorm 2 -------------------------------------------------
    h2 = _layer_norm(h1 + f, g2_ref[0], be2_ref[0])

    o_ref[...] = h2.reshape(B, S, D)


# ------------------------------ kernel wrapper --------------------------------
def encoder_layer(x, key_valid, params):
    """x: (B, S, D) float32; key_valid: (B, S) float32 (1 = attend, 0 = pad)."""
    B, S, D = x.shape
    # Single invocation, no grid: all operands live whole in VMEM for the
    # duration of the kernel (one DMA per array, one prologue total).
    # TODO(synk): on v7x (2 TensorCores) a size-2 "parallel" batch grid could
    # split the two rows across cores; at this size the per-step overhead
    # outweighs the gain, so we keep one fused invocation.
    return pl.pallas_call(
        _encoder_layer_kernel,
        out_shape=jax.ShapeDtypeStruct((B, S, D), jnp.float32),
    )(x, key_valid, *params)


# ------------------------------ pure-JAX reference ----------------------------
def encoder_layer_ref(x, key_valid, params):
    (wq, bq, wk, bk, wv, bv, wo, bo,
     g1, be1, w1, bf1, w2, bf2, g2, be2) = params
    B, S, D = x.shape

    def heads(t):
        return t.reshape(B, S, NUM_HEADS, HEAD_DIM).transpose(0, 2, 1, 3)

    q = heads(x @ wq + bq)
    k = heads(x @ wk + bk)
    v = heads(x @ wv + bv)
    s = jnp.einsum('bhqd,bhkd->bhqk', q, k) / math.sqrt(HEAD_DIM)
    s = jnp.where(key_valid[:, None, None, :] > 0.5, s, NEG_INF)
    p = jax.nn.softmax(s, axis=-1)
    ctx = jnp.einsum('bhqk,bhkd->bhqd', p, v)
    ctx = ctx.transpose(0, 2, 1, 3).reshape(B, S, D)
    attn = ctx @ wo + bo
    h1 = _layer_norm(x + attn, g1, be1)
    f = jnp.maximum(h1 @ w1 + bf1, 0.0) @ w2 + bf2
    return _layer_norm(h1 + f, g2, be2)


# ------------------------------ parameters ------------------------------------
def init_params(key):
    keys = iter(jax.random.split(key, 32))

    def dense(din, dout):
        w = jax.random.normal(next(keys), (din, dout), jnp.float32) * 0.02
        b = jax.random.normal(next(keys), (1, dout), jnp.float32) * 0.02
        return w, b

    wq, bq = dense(D_MODEL, D_MODEL)
    wk, bk = dense(D_MODEL, D_MODEL)
    wv, bv = dense(D_MODEL, D_MODEL)
    wo, bo = dense(D_MODEL, D_MODEL)
    g1 = 1.0 + jax.random.normal(next(keys), (1, D_MODEL), jnp.float32) * 0.02
    be1 = jax.random.normal(next(keys), (1, D_MODEL), jnp.float32) * 0.02
    w1, bf1 = dense(D_MODEL, D_HIDDEN)
    w2, bf2 = dense(D_HIDDEN, D_MODEL)
    g2 = 1.0 + jax.random.normal(next(keys), (1, D_MODEL), jnp.float32) * 0.02
    be2 = jax.random.normal(next(keys), (1, D_MODEL), jnp.float32) * 0.02
    return (wq, bq, wk, bk, wv, bv, wo, bo,
            g1, be1, w1, bf1, w2, bf2, g2, be2)


# --------------------------------- main ----------------------------------------
if __name__ == "__main__":
    key = jax.random.PRNGKey(0)
    pkey, xkey = jax.random.split(key)
    params = init_params(pkey)

    x = jax.random.normal(xkey, (BATCH, SEQ, D_MODEL), jnp.float32)
    # key-padding mask: last two key positions of every batch row are padding
    key_valid = jnp.ones((BATCH, SEQ), jnp.float32).at[:, -2:].set(0.0)

    out = encoder_layer(x, key_valid, params)
    jax.block_until_ready(out)

    ref = encoder_layer_ref(x, key_valid, params)
    assert out.shape == (BATCH, SEQ, D_MODEL)
    assert bool(jnp.all(jnp.isfinite(out)))
    assert float(jnp.max(jnp.abs(out - ref))) < 5e-2
    print("KERNEL_OK")
</pallas_src>

<mosaic_0001>
module attributes {stable_mosaic.version = 11 : i64} {
  func.func @_encoder_layer_kernel(%arg0: memref<2x8x32xf32, #tpu.memory_space<vmem>>, %arg1: memref<2x8xf32, #tpu.memory_space<vmem>>, %arg2: memref<32x32xf32, #tpu.memory_space<vmem>>, %arg3: memref<1x32xf32, #tpu.memory_space<vmem>>, %arg4: memref<32x32xf32, #tpu.memory_space<vmem>>, %arg5: memref<1x32xf32, #tpu.memory_space<vmem>>, %arg6: memref<32x32xf32, #tpu.memory_space<vmem>>, %arg7: memref<1x32xf32, #tpu.memory_space<vmem>>, %arg8: memref<32x32xf32, #tpu.memory_space<vmem>>, %arg9: memref<1x32xf32, #tpu.memory_space<vmem>>, %arg10: memref<1x32xf32, #tpu.memory_space<vmem>>, %arg11: memref<1x32xf32, #tpu.memory_space<vmem>>, %arg12: memref<32x64xf32, #tpu.memory_space<vmem>>, %arg13: memref<1x64xf32, #tpu.memory_space<vmem>>, %arg14: memref<64x32xf32, #tpu.memory_space<vmem>>, %arg15: memref<1x32xf32, #tpu.memory_space<vmem>>, %arg16: memref<1x32xf32, #tpu.memory_space<vmem>>, %arg17: memref<1x32xf32, #tpu.memory_space<vmem>>, %arg18: memref<2x8x32xf32, #tpu.memory_space<vmem>>) attributes {dimension_semantics = [], scalar_prefetch = 0 : i64, scratch_operands = 0 : i64, tpu.core_type = #tpu.core_type<tc>} {
    %c0 = arith.constant 0 : index
    %c0_0 = arith.constant 0 : index
    %c0_1 = arith.constant 0 : index
    %0 = vector.load %arg0[%c0, %c0_0, %c0_1] : memref<2x8x32xf32, #tpu.memory_space<vmem>>, vector<2x8x32xf32>
    %1 = vector.shape_cast %0 : vector<2x8x32xf32> to vector<16x32xf32>
    %c0_2 = arith.constant 0 : index
    %c0_3 = arith.constant 0 : index
    %2 = vector.load %arg2[%c0_2, %c0_3] : memref<32x32xf32, #tpu.memory_space<vmem>>, vector<32x32xf32>
    %cst = arith.constant dense<0.000000e+00> : vector<16x32xf32>
    %3 = tpu.matmul %1, %2, %cst {dimension_numbers = #tpu.dot_dimension_numbers<[1], [0], [0], [1], [0, 0, 1, 1], [], []>} : vector<16x32xf32>, vector<32x32xf32>, vector<16x32xf32> -> vector<16x32xf32>
    %c0_4 = arith.constant 0 : index
    %c0_5 = arith.constant 0 : index
    %4 = vector.load %arg3[%c0_4, %c0_5] : memref<1x32xf32, #tpu.memory_space<vmem>>, vector<1x32xf32>
    %5 = vector.shape_cast %4 : vector<1x32xf32> to vector<32xf32>
    %6 = vector.shape_cast %5 : vector<32xf32> to vector<1x32xf32>
    %7 = vector.broadcast %6 : vector<1x32xf32> to vector<16x32xf32>
    %8 = arith.addf %3, %7 : vector<16x32xf32>
    %c0_6 = arith.constant 0 : index
    %c0_7 = arith.constant 0 : index
    %9 = vector.load %arg4[%c0_6, %c0_7] : memref<32x32xf32, #tpu.memory_space<vmem>>, vector<32x32xf32>
    %cst_8 = arith.constant dense<0.000000e+00> : vector<16x32xf32>
    %10 = tpu.matmul %1, %9, %cst_8 {dimension_numbers = #tpu.dot_dimension_numbers<[1], [0], [0], [1], [0, 0, 1, 1], [], []>} : vector<16x32xf32>, vector<32x32xf32>, vector<16x32xf32> -> vector<16x32xf32>
    %c0_9 = arith.constant 0 : index
    %c0_10 = arith.constant 0 : index
    %11 = vector.load %arg5[%c0_9, %c0_10] : memref<1x32xf32, #tpu.memory_space<vmem>>, vector<1x32xf32>
    %12 = vector.shape_cast %11 : vector<1x32xf32> to vector<32xf32>
    %13 = vector.shape_cast %12 : vector<32xf32> to vector<1x32xf32>
    %14 = vector.broadcast %13 : vector<1x32xf32> to vector<16x32xf32>
    %15 = arith.addf %10, %14 : vector<16x32xf32>
    %c0_11 = arith.constant 0 : index
    %c0_12 = arith.constant 0 : index
    %16 = vector.load %arg6[%c0_11, %c0_12] : memref<32x32xf32, #tpu.memory_space<vmem>>, vector<32x32xf32>
    %cst_13 = arith.constant dense<0.000000e+00> : vector<16x32xf32>
    %17 = tpu.matmul %1, %16, %cst_13 {dimension_numbers = #tpu.dot_dimension_numbers<[1], [0], [0], [1], [0, 0, 1, 1], [], []>} : vector<16x32xf32>, vector<32x32xf32>, vector<16x32xf32> -> vector<16x32xf32>
    %c0_14 = arith.constant 0 : index
    %c0_15 = arith.constant 0 : index
    %18 = vector.load %arg7[%c0_14, %c0_15] : memref<1x32xf32, #tpu.memory_space<vmem>>, vector<1x32xf32>
    %19 = vector.shape_cast %18 : vector<1x32xf32> to vector<32xf32>
    %20 = vector.shape_cast %19 : vector<32xf32> to vector<1x32xf32>
    %21 = vector.broadcast %20 : vector<1x32xf32> to vector<16x32xf32>
    %22 = arith.addf %17, %21 : vector<16x32xf32>
    %c0_16 = arith.constant 0 : index
    %c0_17 = arith.constant 0 : index
    %23 = vector.load %arg1[%c0_16, %c0_17] : memref<2x8xf32, #tpu.memory_space<vmem>>, vector<2x8xf32>
    %cst_18 = arith.constant 5.000000e-01 : f32
    %24 = vector.broadcast %cst_18 : f32 to vector<2x8xf32>
    %25 = arith.cmpf ogt, %23, %24 : vector<2x8xf32>
    %cst_19 = arith.constant 0.000000e+00 : f32
    %cst_20 = arith.constant -1.000000e+09 : f32
    %26 = vector.broadcast %cst_19 : f32 to vector<2x8xf32>
    %27 = vector.broadcast %cst_20 : f32 to vector<2x8xf32>
    %28 = arith.select %25, %26, %27 : vector<2x8xi1>, vector<2x8xf32>
    %29 = vector.shape_cast %28 : vector<2x8xf32> to vector<2x1x8xf32>
    %c0_21 = arith.constant 0 : index
    %c0_22 = arith.constant 0 : index
    %30 = vector.load %arg8[%c0_21, %c0_22] : memref<32x32xf32, #tpu.memory_space<vmem>>, vector<32x32xf32>
    %cst_23 = arith.constant 0.000000e+00 : f32
    %31 = vector.broadcast %cst_23 : f32 to vector<16x32xf32>
    %32 = vector.extract_strided_slice %8 {offsets = [0, 0], sizes = [16, 8], strides = [1, 1]} : vector<16x32xf32> to vector<16x8xf32>
    %33 = vector.shape_cast %32 : vector<16x8xf32> to vector<2x8x8xf32>
    %34 = vector.extract_strided_slice %15 {offsets = [0, 0], sizes = [16, 8], strides = [1, 1]} : vector<16x32xf32> to vector<16x8xf32>
    %35 = vector.shape_cast %34 : vector<16x8xf32> to vector<2x8x8xf32>
    %36 = vector.extract_strided_slice %22 {offsets = [0, 0], sizes = [16, 8], strides = [1, 1]} : vector<16x32xf32> to vector<16x8xf32>
    %37 = vector.shape_cast %36 : vector<16x8xf32> to vector<2x8x8xf32>
    "tpu.trace_start"() <{level = 10 : i32, message = "bqd,bkd->bqk"}> : () -> ()
    %cst_24 = arith.constant dense<0.000000e+00> : vector<2x8x8xf32>
    %38 = tpu.matmul %33, %35, %cst_24 {dimension_numbers = #tpu.dot_dimension_numbers<[2], [2], [1], [1], [0, 0, 0, 1, 1, 1], [0], [0]>} : vector<2x8x8xf32>, vector<2x8x8xf32>, vector<2x8x8xf32> -> vector<2x8x8xf32>
    "tpu.trace_stop"() : () -> ()
    %cst_25 = arith.constant 0.353553385 : f32
    %39 = vector.broadcast %cst_25 : f32 to vector<2x8x8xf32>
    %40 = arith.mulf %38, %39 : vector<2x8x8xf32>
    %41 = vector.broadcast %29 : vector<2x1x8xf32> to vector<2x8x8xf32>
    %42 = arith.addf %40, %41 : vector<2x8x8xf32>
    %cst_26 = arith.constant dense<0xFF800000> : vector<2x8xf32>
    %43 = vector.multi_reduction <maximumf>, %42, %cst_26 [2] : vector<2x8x8xf32> to vector<2x8xf32>
    %44 = vector.shape_cast %43 : vector<2x8xf32> to vector<2x8x1xf32>
    %45 = vector.broadcast %44 : vector<2x8x1xf32> to vector<2x8x8xf32>
    %46 = arith.subf %42, %45 : vector<2x8x8xf32>
    %47 = math.exp %46 : vector<2x8x8xf32>
    %cst_27 = arith.constant dense<0.000000e+00> : vector<2x8xf32>
    %48 = vector.multi_reduction <add>, %47, %cst_27 [2] : vector<2x8x8xf32> to vector<2x8xf32>
    %49 = vector.shape_cast %48 : vector<2x8xf32> to vector<2x8x1xf32>
    %50 = tpu.reciprocal %49 {approx = true} : vector<2x8x1xf32> -> vector<2x8x1xf32>
    %51 = vector.broadcast %50 : vector<2x8x1xf32> to vector<2x8x8xf32>
    %52 = arith.mulf %47, %51 : vector<2x8x8xf32>
    "tpu.trace_start"() <{level = 10 : i32, message = "bqk,bkd->bqd"}> : () -> ()
    %cst_28 = arith.constant dense<0.000000e+00> : vector<2x8x8xf32>
    %53 = tpu.matmul %52, %37, %cst_28 {dimension_numbers = #tpu.dot_dimension_numbers<[2], [1], [1], [2], [0, 0, 0, 1, 1, 2], [0], [0]>} : vector<2x8x8xf32>, vector<2x8x8xf32>, vector<2x8x8xf32> -> vector<2x8x8xf32>
    "tpu.trace_stop"() : () -> ()
    %54 = vector.shape_cast %53 : vector<2x8x8xf32> to vector<16x8xf32>
    %55 = vector.extract_strided_slice %30 {offsets = [0, 0], sizes = [8, 32], strides = [1, 1]} : vector<32x32xf32> to vector<8x32xf32>
    %cst_29 = arith.constant dense<0.000000e+00> : vector<16x32xf32>
    %56 = tpu.matmul %54, %55, %cst_29 {dimension_numbers = #tpu.dot_dimension_numbers<[1], [0], [0], [1], [0, 0, 1, 1], [], []>} : vector<16x8xf32>, vector<8x32xf32>, vector<16x32xf32> -> vector<16x32xf32>
    %57 = arith.addf %31, %56 : vector<16x32xf32>
    %58 = vector.extract_strided_slice %8 {offsets = [0, 8], sizes = [16, 8], strides = [1, 1]} : vector<16x32xf32> to vector<16x8xf32>
    %59 = vector.shape_cast %58 : vector<16x8xf32> to vector<2x8x8xf32>
    %60 = vector.extract_strided_slice %15 {offsets = [0, 8], sizes = [16, 8], strides = [1, 1]} : vector<16x32xf32> to vector<16x8xf32>
    %61 = vector.shape_cast %60 : vector<16x8xf32> to vector<2x8x8xf32>
    %62 = vector.extract_strided_slice %22 {offsets = [0, 8], sizes = [16, 8], strides = [1, 1]} : vector<16x32xf32> to vector<16x8xf32>
    %63 = vector.shape_cast %62 : vector<16x8xf32> to vector<2x8x8xf32>
    "tpu.trace_start"() <{level = 10 : i32, message = "bqd,bkd->bqk"}> : () -> ()
    %cst_30 = arith.constant dense<0.000000e+00> : vector<2x8x8xf32>
    %64 = tpu.matmul %59, %61, %cst_30 {dimension_numbers = #tpu.dot_dimension_numbers<[2], [2], [1], [1], [0, 0, 0, 1, 1, 1], [0], [0]>} : vector<2x8x8xf32>, vector<2x8x8xf32>, vector<2x8x8xf32> -> vector<2x8x8xf32>
    "tpu.trace_stop"() : () -> ()
    %cst_31 = arith.constant 0.353553385 : f32
    %65 = vector.broadcast %cst_31 : f32 to vector<2x8x8xf32>
    %66 = arith.mulf %64, %65 : vector<2x8x8xf32>
    %67 = vector.broadcast %29 : vector<2x1x8xf32> to vector<2x8x8xf32>
    %68 = arith.addf %66, %67 : vector<2x8x8xf32>
    %cst_32 = arith.constant dense<0xFF800000> : vector<2x8xf32>
    %69 = vector.multi_reduction <maximumf>, %68, %cst_32 [2] : vector<2x8x8xf32> to vector<2x8xf32>
    %70 = vector.shape_cast %69 : vector<2x8xf32> to vector<2x8x1xf32>
    %71 = vector.broadcast %70 : vector<2x8x1xf32> to vector<2x8x8xf32>
    %72 = arith.subf %68, %71 : vector<2x8x8xf32>
    %73 = math.exp %72 : vector<2x8x8xf32>
    %cst_33 = arith.constant dense<0.000000e+00> : vector<2x8xf32>
    %74 = vector.multi_reduction <add>, %73, %cst_33 [2] : vector<2x8x8xf32> to vector<2x8xf32>
    %75 = vector.shape_cast %74 : vector<2x8xf32> to vector<2x8x1xf32>
    %76 = tpu.reciprocal %75 {approx = true} : vector<2x8x1xf32> -> vector<2x8x1xf32>
    %77 = vector.broadcast %76 : vector<2x8x1xf32> to vector<2x8x8xf32>
    %78 = arith.mulf %73, %77 : vector<2x8x8xf32>
    "tpu.trace_start"() <{level = 10 : i32, message = "bqk,bkd->bqd"}> : () -> ()
    %cst_34 = arith.constant dense<0.000000e+00> : vector<2x8x8xf32>
    %79 = tpu.matmul %78, %63, %cst_34 {dimension_numbers = #tpu.dot_dimension_numbers<[2], [1], [1], [2], [0, 0, 0, 1, 1, 2], [0], [0]>} : vector<2x8x8xf32>, vector<2x8x8xf32>, vector<2x8x8xf32> -> vector<2x8x8xf32>
    "tpu.trace_stop"() : () -> ()
    %80 = vector.shape_cast %79 : vector<2x8x8xf32> to vector<16x8xf32>
    %81 = vector.extract_strided_slice %30 {offsets = [8, 0], sizes = [8, 32], strides = [1, 1]} : vector<32x32xf32> to vector<8x32xf32>
    %cst_35 = arith.constant dense<0.000000e+00> : vector<16x32xf32>
    %82 = tpu.matmul %80, %81, %cst_35 {dimension_numbers = #tpu.dot_dimension_numbers<[1], [0], [0], [1], [0, 0, 1, 1], [], []>} : vector<16x8xf32>, vector<8x32xf32>, vector<16x32xf32> -> vector<16x32xf32>
    %83 = arith.addf %57, %82 : vector<16x32xf32>
    %84 = vector.extract_strided_slice %8 {offsets = [0, 16], sizes = [16, 8], strides = [1, 1]} : vector<16x32xf32> to vector<16x8xf32>
    %85 = vector.shape_cast %84 : vector<16x8xf32> to vector<2x8x8xf32>
    %86 = vector.extract_strided_slice %15 {offsets = [0, 16], sizes = [16, 8], strides = [1, 1]} : vector<16x32xf32> to vector<16x8xf32>
    %87 = vector.shape_cast %86 : vector<16x8xf32> to vector<2x8x8xf32>
    %88 = vector.extract_strided_slice %22 {offsets = [0, 16], sizes = [16, 8], strides = [1, 1]} : vector<16x32xf32> to vector<16x8xf32>
    %89 = vector.shape_cast %88 : vector<16x8xf32> to vector<2x8x8xf32>
    "tpu.trace_start"() <{level = 10 : i32, message = "bqd,bkd->bqk"}> : () -> ()
    %cst_36 = arith.constant dense<0.000000e+00> : vector<2x8x8xf32>
    %90 = tpu.matmul %85, %87, %cst_36 {dimension_numbers = #tpu.dot_dimension_numbers<[2], [2], [1], [1], [0, 0, 0, 1, 1, 1], [0], [0]>} : vector<2x8x8xf32>, vector<2x8x8xf32>, vector<2x8x8xf32> -> vector<2x8x8xf32>
    "tpu.trace_stop"() : () -> ()
    %cst_37 = arith.constant 0.353553385 : f32
    %91 = vector.broadcast %cst_37 : f32 to vector<2x8x8xf32>
    %92 = arith.mulf %90, %91 : vector<2x8x8xf32>
    %93 = vector.broadcast %29 : vector<2x1x8xf32> to vector<2x8x8xf32>
    %94 = arith.addf %92, %93 : vector<2x8x8xf32>
    %cst_38 = arith.constant dense<0xFF800000> : vector<2x8xf32>
    %95 = vector.multi_reduction <maximumf>, %94, %cst_38 [2] : vector<2x8x8xf32> to vector<2x8xf32>
    %96 = vector.shape_cast %95 : vector<2x8xf32> to vector<2x8x1xf32>
    %97 = vector.broadcast %96 : vector<2x8x1xf32> to vector<2x8x8xf32>
    %98 = arith.subf %94, %97 : vector<2x8x8xf32>
    %99 = math.exp %98 : vector<2x8x8xf32>
    %cst_39 = arith.constant dense<0.000000e+00> : vector<2x8xf32>
    %100 = vector.multi_reduction <add>, %99, %cst_39 [2] : vector<2x8x8xf32> to vector<2x8xf32>
    %101 = vector.shape_cast %100 : vector<2x8xf32> to vector<2x8x1xf32>
    %102 = tpu.reciprocal %101 {approx = true} : vector<2x8x1xf32> -> vector<2x8x1xf32>
    %103 = vector.broadcast %102 : vector<2x8x1xf32> to vector<2x8x8xf32>
    %104 = arith.mulf %99, %103 : vector<2x8x8xf32>
    "tpu.trace_start"() <{level = 10 : i32, message = "bqk,bkd->bqd"}> : () -> ()
    %cst_40 = arith.constant dense<0.000000e+00> : vector<2x8x8xf32>
    %105 = tpu.matmul %104, %89, %cst_40 {dimension_numbers = #tpu.dot_dimension_numbers<[2], [1], [1], [2], [0, 0, 0, 1, 1, 2], [0], [0]>} : vector<2x8x8xf32>, vector<2x8x8xf32>, vector<2x8x8xf32> -> vector<2x8x8xf32>
    "tpu.trace_stop"() : () -> ()
    %106 = vector.shape_cast %105 : vector<2x8x8xf32> to vector<16x8xf32>
    %107 = vector.extract_strided_slice %30 {offsets = [16, 0], sizes = [8, 32], strides = [1, 1]} : vector<32x32xf32> to vector<8x32xf32>
    %cst_41 = arith.constant dense<0.000000e+00> : vector<16x32xf32>
    %108 = tpu.matmul %106, %107, %cst_41 {dimension_numbers = #tpu.dot_dimension_numbers<[1], [0], [0], [1], [0, 0, 1, 1], [], []>} : vector<16x8xf32>, vector<8x32xf32>, vector<16x32xf32> -> vector<16x32xf32>
    %109 = arith.addf %83, %108 : vector<16x32xf32>
    %110 = vector.extract_strided_slice %8 {offsets = [0, 24], sizes = [16, 8], strides = [1, 1]} : vector<16x32xf32> to vector<16x8xf32>
    %111 = vector.shape_cast %110 : vector<16x8xf32> to vector<2x8x8xf32>
    %112 = vector.extract_strided_slice %15 {offsets = [0, 24], sizes = [16, 8], strides = [1, 1]} : vector<16x32xf32> to vector<16x8xf32>
    %113 = vector.shape_cast %112 : vector<16x8xf32> to vector<2x8x8xf32>
    %114 = vector.extract_strided_slice %22 {offsets = [0, 24], sizes = [16, 8], strides = [1, 1]} : vector<16x32xf32> to vector<16x8xf32>
    %115 = vector.shape_cast %114 : vector<16x8xf32> to vector<2x8x8xf32>
    "tpu.trace_start"() <{level = 10 : i32, message = "bqd,bkd->bqk"}> : () -> ()
    %cst_42 = arith.constant dense<0.000000e+00> : vector<2x8x8xf32>
    %116 = tpu.matmul %111, %113, %cst_42 {dimension_numbers = #tpu.dot_dimension_numbers<[2], [2], [1], [1], [0, 0, 0, 1, 1, 1], [0], [0]>} : vector<2x8x8xf32>, vector<2x8x8xf32>, vector<2x8x8xf32> -> vector<2x8x8xf32>
    "tpu.trace_stop"() : () -> ()
    %cst_43 = arith.constant 0.353553385 : f32
    %117 = vector.broadcast %cst_43 : f32 to vector<2x8x8xf32>
    %118 = arith.mulf %116, %117 : vector<2x8x8xf32>
    %119 = vector.broadcast %29 : vector<2x1x8xf32> to vector<2x8x8xf32>
    %120 = arith.addf %118, %119 : vector<2x8x8xf32>
    %cst_44 = arith.constant dense<0xFF800000> : vector<2x8xf32>
    %121 = vector.multi_reduction <maximumf>, %120, %cst_44 [2] : vector<2x8x8xf32> to vector<2x8xf32>
    %122 = vector.shape_cast %121 : vector<2x8xf32> to vector<2x8x1xf32>
    %123 = vector.broadcast %122 : vector<2x8x1xf32> to vector<2x8x8xf32>
    %124 = arith.subf %120, %123 : vector<2x8x8xf32>
    %125 = math.exp %124 : vector<2x8x8xf32>
    %cst_45 = arith.constant dense<0.000000e+00> : vector<2x8xf32>
    %126 = vector.multi_reduction <add>, %125, %cst_45 [2] : vector<2x8x8xf32> to vector<2x8xf32>
    %127 = vector.shape_cast %126 : vector<2x8xf32> to vector<2x8x1xf32>
    %128 = tpu.reciprocal %127 {approx = true} : vector<2x8x1xf32> -> vector<2x8x1xf32>
    %129 = vector.broadcast %128 : vector<2x8x1xf32> to vector<2x8x8xf32>
    %130 = arith.mulf %125, %129 : vector<2x8x8xf32>
    "tpu.trace_start"() <{level = 10 : i32, message = "bqk,bkd->bqd"}> : () -> ()
    %cst_46 = arith.constant dense<0.000000e+00> : vector<2x8x8xf32>
    %131 = tpu.matmul %130, %115, %cst_46 {dimension_numbers = #tpu.dot_dimension_numbers<[2], [1], [1], [2], [0, 0, 0, 1, 1, 2], [0], [0]>} : vector<2x8x8xf32>, vector<2x8x8xf32>, vector<2x8x8xf32> -> vector<2x8x8xf32>
    "tpu.trace_stop"() : () -> ()
    %132 = vector.shape_cast %131 : vector<2x8x8xf32> to vector<16x8xf32>
    %133 = vector.extract_strided_slice %30 {offsets = [24, 0], sizes = [8, 32], strides = [1, 1]} : vector<32x32xf32> to vector<8x32xf32>
    %cst_47 = arith.constant dense<0.000000e+00> : vector<16x32xf32>
    %134 = tpu.matmul %132, %133, %cst_47 {dimension_numbers = #tpu.dot_dimension_numbers<[1], [0], [0], [1], [0, 0, 1, 1], [], []>} : vector<16x8xf32>, vector<8x32xf32>, vector<16x32xf32> -> vector<16x32xf32>
    %135 = arith.addf %109, %134 : vector<16x32xf32>
    %c0_48 = arith.constant 0 : index
    %c0_49 = arith.constant 0 : index
    %136 = vector.load %arg9[%c0_48, %c0_49] : memref<1x32xf32, #tpu.memory_space<vmem>>, vector<1x32xf32>
    %137 = vector.shape_cast %136 : vector<1x32xf32> to vector<32xf32>
    %138 = vector.shape_cast %137 : vector<32xf32> to vector<1x32xf32>
    %139 = vector.broadcast %138 : vector<1x32xf32> to vector<16x32xf32>
    %140 = arith.addf %135, %139 : vector<16x32xf32>
    %141 = arith.addf %1, %140 : vector<16x32xf32>
    %c0_50 = arith.constant 0 : index
    %c0_51 = arith.constant 0 : index
    %142 = vector.load %arg10[%c0_50, %c0_51] : memref<1x32xf32, #tpu.memory_space<vmem>>, vector<1x32xf32>
    %143 = vector.shape_cast %142 : vector<1x32xf32> to vector<32xf32>
    %c0_52 = arith.constant 0 : index
    %c0_53 = arith.constant 0 : index
    %144 = vector.load %arg11[%c0_52, %c0_53] : memref<1x32xf32, #tpu.memory_space<vmem>>, vector<1x32xf32>
    %145 = vector.shape_cast %144 : vector<1x32xf32> to vector<32xf32>
    %cst_54 = arith.constant dense<0.000000e+00> : vector<16xf32>
    %146 = vector.multi_reduction <add>, %141, %cst_54 [1] : vector<16x32xf32> to vector<16xf32>
    %147 = vector.shape_cast %146 : vector<16xf32> to vector<16x1xf32>
    %cst_55 = arith.constant 3.200000e+01 : f32
    %148 = vector.broadcast %cst_55 : f32 to vector<16x1xf32>
    %149 = arith.divf %147, %148 : vector<16x1xf32>
    %150 = vector.broadcast %149 : vector<16x1xf32> to vector<16x32xf32>
    %151 = arith.subf %141, %150 : vector<16x32xf32>
    %152 = arith.mulf %151, %151 : vector<16x32xf32>
    %cst_56 = arith.constant dense<0.000000e+00> : vector<16xf32>
    %153 = vector.multi_reduction <add>, %152, %cst_56 [1] : vector<16x32xf32> to vector<16xf32>
    %154 = vector.shape_cast %153 : vector<16xf32> to vector<16x1xf32>
    %cst_57 = arith.constant 3.200000e+01 : f32
    %155 = vector.broadcast %cst_57 : f32 to vector<16x1xf32>
    %156 = arith.divf %154, %155 : vector<16x1xf32>
    %157 = vector.broadcast %149 : vector<16x1xf32> to vector<16x32xf32>
    %158 = arith.subf %141, %157 : vector<16x32xf32>
    %cst_58 = arith.constant 9.99999996E-13 : f32
    %159 = vector.broadcast %cst_58 : f32 to vector<16x1xf32>
    %160 = arith.addf %156, %159 : vector<16x1xf32>
    %161 = math.rsqrt %160 : vector<16x1xf32>
    %162 = vector.broadcast %161 : vector<16x1xf32> to vector<16x32xf32>
    %163 = arith.mulf %158, %162 : vector<16x32xf32>
    %164 = vector.shape_cast %143 : vector<32xf32> to vector<1x32xf32>
    %165 = vector.broadcast %164 : vector<1x32xf32> to vector<16x32xf32>
    %166 = arith.mulf %163, %165 : vector<16x32xf32>
    %167 = vector.shape_cast %145 : vector<32xf32> to vector<1x32xf32>
    %168 = vector.broadcast %167 : vector<1x32xf32> to vector<16x32xf32>
    %169 = arith.addf %166, %168 : vector<16x32xf32>
    %c0_59 = arith.constant 0 : index
    %c0_60 = arith.constant 0 : index
    %170 = vector.load %arg12[%c0_59, %c0_60] : memref<32x64xf32, #tpu.memory_space<vmem>>, vector<32x64xf32>
    %cst_61 = arith.constant dense<0.000000e+00> : vector<16x64xf32>
    %171 = tpu.matmul %169, %170, %cst_61 {dimension_numbers = #tpu.dot_dimension_numbers<[1], [0], [0], [1], [0, 0, 1, 1], [], []>} : vector<16x32xf32>, vector<32x64xf32>, vector<16x64xf32> -> vector<16x64xf32>
    %c0_62 = arith.constant 0 : index
    %c0_63 = arith.constant 0 : index
    %172 = vector.load %arg13[%c0_62, %c0_63] : memref<1x64xf32, #tpu.memory_space<vmem>>, vector<1x64xf32>
    %173 = vector.shape_cast %172 : vector<1x64xf32> to vector<64xf32>
    %174 = vector.shape_cast %173 : vector<64xf32> to vector<1x64xf32>
    %175 = vector.broadcast %174 : vector<1x64xf32> to vector<16x64xf32>
    %176 = arith.addf %171, %175 : vector<16x64xf32>
    %cst_64 = arith.constant 0.000000e+00 : f32
    %177 = vector.broadcast %cst_64 : f32 to vector<16x64xf32>
    %178 = arith.maximumf %176, %177 : vector<16x64xf32>
    %c0_65 = arith.constant 0 : index
    %c0_66 = arith.constant 0 : index
    %179 = vector.load %arg14[%c0_65, %c0_66] : memref<64x32xf32, #tpu.memory_space<vmem>>, vector<64x32xf32>
    %cst_67 = arith.constant dense<0.000000e+00> : vector<16x32xf32>
    %180 = tpu.matmul %178, %179, %cst_67 {dimension_numbers = #tpu.dot_dimension_numbers<[1], [0], [0], [1], [0, 0, 1, 1], [], []>} : vector<16x64xf32>, vector<64x32xf32>, vector<16x32xf32> -> vector<16x32xf32>
    %c0_68 = arith.constant 0 : index
    %c0_69 = arith.constant 0 : index
    %181 = vector.load %arg15[%c0_68, %c0_69] : memref<1x32xf32, #tpu.memory_space<vmem>>, vector<1x32xf32>
    %182 = vector.shape_cast %181 : vector<1x32xf32> to vector<32xf32>
    %183 = vector.shape_cast %182 : vector<32xf32> to vector<1x32xf32>
    %184 = vector.broadcast %183 : vector<1x32xf32> to vector<16x32xf32>
    %185 = arith.addf %180, %184 : vector<16x32xf32>
    %186 = arith.addf %169, %185 : vector<16x32xf32>
    %c0_70 = arith.constant 0 : index
    %c0_71 = arith.constant 0 : index
    %187 = vector.load %arg16[%c0_70, %c0_71] : memref<1x32xf32, #tpu.memory_space<vmem>>, vector<1x32xf32>
    %188 = vector.shape_cast %187 : vector<1x32xf32> to vector<32xf32>
    %c0_72 = arith.constant 0 : index
    %c0_73 = arith.constant 0 : index
    %189 = vector.load %arg17[%c0_72, %c0_73] : memref<1x32xf32, #tpu.memory_space<vmem>>, vector<1x32xf32>
    %190 = vector.shape_cast %189 : vector<1x32xf32> to vector<32xf32>
    %cst_74 = arith.constant dense<0.000000e+00> : vector<16xf32>
    %191 = vector.multi_reduction <add>, %186, %cst_74 [1] : vector<16x32xf32> to vector<16xf32>
    %192 = vector.shape_cast %191 : vector<16xf32> to vector<16x1xf32>
    %cst_75 = arith.constant 3.200000e+01 : f32
    %193 = vector.broadcast %cst_75 : f32 to vector<16x1xf32>
    %194 = arith.divf %192, %193 : vector<16x1xf32>
    %195 = vector.broadcast %194 : vector<16x1xf32> to vector<16x32xf32>
    %196 = arith.subf %186, %195 : vector<16x32xf32>
    %197 = arith.mulf %196, %196 : vector<16x32xf32>
    %cst_76 = arith.constant dense<0.000000e+00> : vector<16xf32>
    %198 = vector.multi_reduction <add>, %197, %cst_76 [1] : vector<16x32xf32> to vector<16xf32>
    %199 = vector.shape_cast %198 : vector<16xf32> to vector<16x1xf32>
    %cst_77 = arith.constant 3.200000e+01 : f32
    %200 = vector.broadcast %cst_77 : f32 to vector<16x1xf32>
    %201 = arith.divf %199, %200 : vector<16x1xf32>
    %202 = vector.broadcast %194 : vector<16x1xf32> to vector<16x32xf32>
    %203 = arith.subf %186, %202 : vector<16x32xf32>
    %cst_78 = arith.constant 9.99999996E-13 : f32
    %204 = vector.broadcast %cst_78 : f32 to vector<16x1xf32>
    %205 = arith.addf %201, %204 : vector<16x1xf32>
    %206 = math.rsqrt %205 : vector<16x1xf32>
    %207 = vector.broadcast %206 : vector<16x1xf32> to vector<16x32xf32>
    %208 = arith.mulf %203, %207 : vector<16x32xf32>
    %209 = vector.shape_cast %188 : vector<32xf32> to vector<1x32xf32>
    %210 = vector.broadcast %209 : vector<1x32xf32> to vector<16x32xf32>
    %211 = arith.mulf %208, %210 : vector<16x32xf32>
    %212 = vector.shape_cast %190 : vector<32xf32> to vector<1x32xf32>
    %213 = vector.broadcast %212 : vector<1x32xf32> to vector<16x32xf32>
    %214 = arith.addf %211, %213 : vector<16x32xf32>
    %215 = vector.shape_cast %214 : vector<16x32xf32> to vector<2x8x32xf32>
    %c0_79 = arith.constant 0 : index
    %c0_80 = arith.constant 0 : index
    %c0_81 = arith.constant 0 : index
    %216 = vector.load %arg18[%c0_79, %c0_80, %c0_81] : memref<2x8x32xf32, #tpu.memory_space<vmem>>, vector<2x8x32xf32>
    tpu.vector_store %arg18[%c0_79, %c0_80, %c0_81], %215 {strides = array<i32>} : memref<2x8x32xf32, #tpu.memory_space<vmem>>, vector<2x8x32xf32>,
    return
  }
}

</mosaic_0001>

<bundles_post_ra>
// kernel: tpu_custom_call.1
= control target key start
LH: loop header
LB: loop body
LE: loop exit
PB: predicated region body
PF: predicated region fallthrough
CT: control target
= control target key end

     0   :  { %s1744_s0 = inlined_call_operand.hbm [shape: f32[2,8,32], index: 0, kind: input, shape index: {}]   ;;  %s1745_s1 = inlined_call_operand.hbm [shape: f32[2,8], index: 1, kind: input, shape index: {}]   ;;  %s1746_s2 = inlined_call_operand.vmem [shape: f32[32,32], index: 2, kind: input, shape index: {}]   ;;  %s1747_s3 = inlined_call_operand.vmem [shape: f32[1,32], index: 3, kind: input, shape index: {}]   ;;  %s1748_s4 = inlined_call_operand.vmem [shape: f32[32,32], index: 4, kind: input, shape index: {}]   ;;  %s1749_s5 = inlined_call_operand.vmem [shape: f32[1,32], index: 5, kind: input, shape index: {}]   ;;  %s1750_s6 = inlined_call_operand.vmem [shape: f32[32,32], index: 6, kind: input, shape index: {}]   ;;  %s1751_s7 = inlined_call_operand.vmem [shape: f32[1,32], index: 7, kind: input, shape index: {}]   ;;  %s1752_s8 = inlined_call_operand.hbm [shape: f32[32,32], index: 8, kind: input, shape index: {}]   ;;  %s1753_s9 = inlined_call_operand.vmem [shape: f32[1,32], index: 9, kind: input, shape index: {}]   ;;  %s1754_s10 = inlined_call_operand.vmem [shape: f32[1,32], index: 10, kind: input, shape index: {}]   ;;  %s1755_s11 = inlined_call_operand.vmem [shape: f32[1,32], index: 11, kind: input, shape index: {}]   ;;  %s1756_s12 = inlined_call_operand.hbm [shape: f32[32,64], index: 12, kind: input, shape index: {}]   ;;  %s1757_s13 = inlined_call_operand.vmem [shape: f32[1,64], index: 13, kind: input, shape index: {}]   ;;  %s1758_s14 = inlined_call_operand.vmem [shape: f32[64,32], index: 14, kind: input, shape index: {}]   ;;  %s1759_s15 = inlined_call_operand.vmem [shape: f32[1,32], index: 15, kind: input, shape index: {}]   ;;  %s1760_s16 = inlined_call_operand.vmem [shape: f32[1,32], index: 16, kind: input, shape index: {}]   ;;  %s1761_s17 = inlined_call_operand.vmem [shape: f32[1,32], index: 17, kind: input, shape index: {}]   ;;  %s1762_s18 = inlined_call_operand.hbm [shape: f32[2,8,32], index: 18, kind: output, shape index: {}]  }
   0x1   :  { %1764 = sst [smem:[#allocation15_spill]] %s1744_s0 }
   0x2   :  { %1765 = sst [smem:[#allocation16_spill]] %s1745_s1 }
   0x3   :  { %1766 = sst [smem:[#allocation17_spill]] %s1746_s2 }
   0x4   :  { %23 = vsyncpa [#allocation3], 0 }
   0x5   :  { %24 = vsyncpa [#allocation6], 0 }
   0x6   :  { %25 = vsyncpa [#allocation9], 0  ;;  %s1767_s29 = sld [smem:[#allocation16_spill]] }
   0xc   :  { %s45_s30 = sshll.u32 %s1767_s29, 4  ;;  %s46_s30 = int_to_ptr.hbm [resolvable:$true] %s45_s30 }
   0xd   :  { %26 = vsyncpa [#allocation4], 0  ;;  %s1361_s0 = smov [#allocation5]   ;;  %s1768_s21 = sld [smem:[#allocation15_spill]] }
   0xe   :  { %s47_s19 = sshll.u32 %s1361_s0, 4  ;;  %s1362_s2 = smov [#allocation2]   ;;  %s48_s19 = int_to_ptr.vmem [resolvable:$true] %s47_s19 }
   0xf   :  { %50 = dma.hbm_to_vmem [thread:$0]  %s46_s30, 32, %s48_s19, [#allocation6]  }
  0x10   :  { %s33_s23 = sshll.u32 %s1362_s2, 4  ;;  %s1363_s24 = smov 128   ;;  %s34_s23 = int_to_ptr.vmem [resolvable:$true] %s33_s23 }
  0x11   :  { %s1364_s25 = smov 8   ;;  %s67_s28 = sshll.u32 %s1752_s8, 4  ;;  %s68_s28 = int_to_ptr.hbm [resolvable:$true] %s67_s28 }
  0x12   :  { %s1365_s29 = smov [#allocation7]   ;;  %s86_s19 = sshll.u32 %s1756_s12, 4  ;;  %s87_s19 = int_to_ptr.hbm [resolvable:$true] %s86_s19 }
  0x13   :  { %s31_s22 = sshll.u32 %s1768_s21, 4  ;;  %s69_s0 = sshll.u32 %s1365_s29, 4  ;;  %s32_s22 = int_to_ptr.hbm [resolvable:$true] %s31_s22  ;;  %s70_s0 = int_to_ptr.vmem [resolvable:$true] %s69_s0 }
  0x14   :  { %39 = dma.hbm_to_vmem [thread:$0]  %s32_s22, 256, %s34_s23, [#allocation3], %s1363_s24, %s1363_s24, %s1364_s25  }
  0x15   :  { %75 = dma.hbm_to_vmem [thread:$0]  %s68_s28, 512, %s70_s0, [#allocation6], %s1363_s24, %s1363_s24, %s1364_s25  }
  0x16   :  { %s1366_s20 = smov [#allocation8]  }
  0x17   :  { %s88_s21 = sshll.u32 %s1366_s20, 4  ;;  %s89_s21 = int_to_ptr.vmem [resolvable:$true] %s88_s21 }
  0x18   :  { %94 = dma.hbm_to_vmem [thread:$0]  %s87_s19, 512, %s89_s21, [#allocation9], %s1363_s24, %s1363_s24, %s1364_s25  }
  0x19   :  { %1353 = dma.done.wait [#allocation3], 256  }
  0x1a   :  { %1354 = vsyncadd [#allocation3], 4294967040 }
  0x1b   :  { %1355 = dma.done.wait [#allocation6], 544  }
  0x1c   :  { %1356 = vsyncadd [#allocation6], 4294966752 }
  0x1d   :  { %1357 = dma.done.wait [#allocation9], 512  }
  0x1e   :  { %1358 = vsyncadd [#allocation9], 4294966784  ;;  %v164_v0 = vld [vmem:[%s1748_s4 + $0x18] sm:$0xff]  ;;  %s1769_s23 = sld [smem:[#allocation17_spill]]  ;;  %v163_v2 = vld [vmem:[%s1748_s4 + $0x10] sm:$0xff]  ;;  %vm131_vm0 = vcmask 261120  }
  0x1f   :  { %181 = vmatpush.msra.mxu1 %v164_v0  ;;  %v162_v4 = vld [vmem:[%s1748_s4 + $0x8] sm:$0xff]  ;;  %v161_v6 = vld [vmem:[%s1748_s4] sm:$0xff]  ;;  %v195_v10 = vld [vmem:[%s1750_s6 + $0x18] sm:$0xff]  ;;  %vm232_vm1 = vcmask 64512   ;;  %s1368_s20 = smov 112   ;;  %vm1007_vm10 = vcmask 523264  }
  0x20   :  { %v1510_v7 = vld [vmem:[#allocation2] sm:$0xff]  ;;  %v1515_v9 = vld [vmem:[#allocation2 + $0x8] sm:$0xff]  ;;  %v194_v11 = vld [vmem:[%s1750_s6 + $0x10] sm:$0xff]  ;;  %v1369_v31 = vmov -1e+09  }
  0x21   :  { %182 = vmatpush.msra.mxu1 %v163_v2  ;;  %v193_v12 = vld [vmem:[%s1750_s6 + $0x8] sm:$0xff]  ;;  %v192_v13 = vld [vmem:[%s1750_s6] sm:$0xff]  ;;  %s1367_s6 = smov 120   ;;  %v223_v29 = vld [vmem:[#allocation5] sm:$0x3] }
  0x22   :  { %v1181_v14 = vld [vmem:[%s1749_s5] ss:$0 sm:$0xff]  ;;  %vm224_vm2 = vcmp.gt.f32.partialorder %v223_v29, 0.5 }
  0x23   :  { %183 = vmatpush.msra.mxu1 %v162_v4  ;;  %v1182_v15 = vld [vmem:[%s1747_s3] ss:$0 sm:$0xff]  ;;  %v225_v32 = vsel %vm224_vm2, 0.0, %v1369_v31 }
  0x24   :  { %v126_v1 = vld [vmem:[%s1769_s23 + $0x18] sm:$0xff]  ;;  %v125_v3 = vld [vmem:[%s1769_s23 + $0x10] sm:$0xff]  ;;  %v124_v5 = vld [vmem:[%s1769_s23 + $0x8] sm:$0xff]  ;;  %v1581_v33 = vperm.slane %v225_v32, 0  ;;  %v227_v38 = vrot.slane %v225_v32, 1 }
  0x25   :  { %1160 = vmatpush.msra.mxu2 %v126_v1  ;;  %150 = vmatpush.msra.mxu0 %v126_v1  ;;  %v123_v8 = vld [vmem:[%s1769_s23] sm:$0xff]  ;;  %s1103_s23 = sshll.u32 %s1762_s18, 4  ;;  %s1104_s23 = int_to_ptr.hbm [resolvable:$true] %s1103_s23 }
  0x26   :  { %184 = vmatpush.msra.mxu1 %v161_v6  ;;  %v1183_v22 = vld [vmem:[%s1751_s7] ss:$0 sm:$0xff]  ;;  %v1585_v41 = vperm.slane %v227_v38, 0  ;;  %s1370_s7 = smov 104  }
  0x27   :  { %1161 = vmatpush.msra.mxu2 %v125_v3  ;;  %151 = vmatpush.msra.mxu0 %v125_v3 }
  0x28   :  { %1120 = vmatmul.msk.f32.vlgmr.msra.gmra.mxu1 %vm131_vm0, %v1510_v7 }
  0x29   :  { %1162 = vmatpush.msra.mxu2 %v124_v5  ;;  %152 = vmatpush.msra.mxu0 %v124_v5 }
  0x2b   :  { %1163 = vmatpush.msra.mxu2 %v123_v8  ;;  %153 = vmatpush.msra.mxu0 %v123_v8  ;;  %v228_v8 = vld [vmem:[#allocation7] sm:$0xff] }
  0x2c   :  { %1119 = vmatmul.msk.f32.vlgmr.msra.gmra.mxu2 %vm131_vm0, %v1515_v9  ;;  %1118 = vmatmul.msk.f32.vlgmr.msra.gmra.mxu0 %vm131_vm0, %v1510_v7 }
  0x2d   :  { %212 = vmatpush.msrb.mxu2 %v195_v10 }
  0x2f   :  { %213 = vmatpush.msrb.mxu2 %v194_v11 }
  0x30   :  { %1121 = vmatmul.msk.f32.gmra.mxu1 %vm131_vm0, %v1515_v9 }
  0x31   :  { %214 = vmatpush.msrb.mxu2 %v193_v12 }
  0x33   :  { %215 = vmatpush.msrb.mxu2 %v192_v13 }
  0x34   :  { %1122 = vmatmul.msk.f32.vlgmr.msrb.gmra.mxu2 %vm131_vm0, %v1510_v7 }
  0x3c   :  { %1123 = vmatmul.msk.f32.gmra.mxu2 %vm131_vm0, %v1515_v9 }
  0xa5   :  { %v186_v16 = vpop.f32.mrf.mxu1 }
  0xa6   :  { %v1547_v17 = vadd.f32 %v1181_v14, %v186_v16 }
  0xa8   :  { %363 = vrot.lane.b32.xlu0 %v1547_v17, %s1367_s6  ;;  %1124 = vmatpush.xpose.msk.msra.mxu3 %vm232_vm1, %v1547_v17 }
  0xa9   :  { %v155_v18 = vpop.f32.mrf.mxu0 }
  0xaa   :  { %v1549_v19 = vadd.f32 %v1182_v15, %v155_v18 }
  0xac   :  { %1125 = vmatmul.msk.f32.vlgmr.msra.gmra.mxu3 %vm232_vm1, %v1549_v19 }
  0xad   :  { %v189_v26 = vpop.f32.mrf.mxu1 }
  0xae   :  { %v1573_v27 = vadd.f32 %v1181_v14, %v189_v26 }
  0xaf   :  { %v158_v20 = vpop.f32.mrf.mxu2 }
  0xb0   :  { %v1557_v21 = vadd.f32 %v1182_v15, %v158_v20  ;;  %361 = vrot.lane.b32.xlu0 %v1549_v19, %s1367_s6  ;;  %1126 = vmatpush.xpose.msk.msrb.mxu3 %vm232_vm1, %v1573_v27  ;;  %v229_v20 = vld [vmem:[#allocation7 + $0x8] sm:$0xff] }
  0xb4   :  { %1127 = vmatmul.msk.f32.vlgmr.msrb.gmra.mxu3 %vm232_vm1, %v1557_v21 }
  0xb7   :  { %v217_v23 = vpop.f32.mrf.mxu2 }
  0xb8   :  { %v1564_v24 = vadd.f32 %v1183_v22, %v217_v23 }
  0xba   :  { %444 = vrot.lane.b32.xlu0 %v1564_v24, %s1367_s6  ;;  %333 = vmatpush.msra.mxu3 %v1564_v24 }
  0xbf   :  { %v220_v53 = vpop.f32.mrf.mxu2 }
  0xc0   :  { %v1594_v54 = vadd.f32 %v1183_v22, %v220_v53 }
  0xc2   :  { %557 = vrot.lane.b32.xlu0 %v1547_v17, %s1368_s20  ;;  %356 = vmatpush.msrb.mxu0 %v1594_v54 }
  0xca   :  { %555 = vrot.lane.b32.xlu0 %v1549_v19, %s1368_s20 }
 0x11a   :  { %v364_v25 = vpop.permute.xlu0 %363 }
 0x11b   :  { %1130 = vmatpush.xpose.msk.msrb.mxu1 %vm232_vm1, %v364_v25 }
 0x11f   :  { %518 = vmatpush.msra.mxu1 %v229_v20 }
 0x122   :  { %v362_v28 = vpop.permute.xlu0 %361 }
 0x123   :  { %1131 = vmatmul.msk.f32.vlgmr.msrb.gmra.mxu1 %vm232_vm1, %v362_v28 }
 0x12c   :  { %v445_v30 = vpop.permute.xlu0 %444 }
 0x12d   :  { %465 = vmatpush.msrb.mxu3 %v445_v30 }
 0x12f   :  { %v256_v34 = vpop.f32.mrf.mxu3 }
 0x130   :  { %v285_v35 = vmul.f32 0.35355338, %v256_v34 }
 0x132   :  { %v291_v36 = vadd.f32 %v1581_v33, %v285_v35 }
 0x134   :  { %v293_v37 = vsel %vm232_vm1, %v291_v36, -inf  ;;  %v558_v63 = vpop.permute.xlu0 %557 }
 0x135   :  { %294 = vmax.xlane.f32.xlu1 %v293_v37 }
 0x137   :  { %v282_v43 = vpop.f32.mrf.mxu3 }
 0x138   :  { %v286_v44 = vmul.f32 0.35355338, %v282_v43 }
 0x13a   :  { %v292_v46 = vadd.f32 %v1585_v41, %v286_v44 }
 0x13c   :  { %v296_v49 = vsel %vm232_vm1, %v292_v46, -inf  ;;  %v556_v1 = vpop.permute.xlu0 %555 }
 0x13d   :  { %297 = vmax.xlane.f32.xlu0 %v296_v49 }
 0x1a0   :  { %v386_v39 = vpop.f32.mrf.mxu1 }
 0x1a1   :  { %v417_v40 = vmul.f32 0.35355338, %v386_v39 }
 0x1a3   :  { %v419_v42 = vadd.f32 %v417_v40, %v1581_v33 }
 0x1a5   :  { %v421_v45 = vsel %vm232_vm1, %v419_v42, -inf }
 0x1a6   :  { %422 = vmax.xlane.f32.xlu1 %v421_v45 }
 0x1a8   :  { %v295_v47 = vpop.xlane.xlu1 %294 }
 0x1a9   :  { %v299_v48 = vsub.f32 %v291_v36, %v295_v47 }
 0x1ab   :  { %v301_v50 = vmul.f32 1.442695, %v299_v48 }
 0x1ad   :  { %1191 = vpow2.f32 %v301_v50 }
 0x1b0   :  { %v298_v2 = vpop.xlane.xlu0 %297 }
 0x1b1   :  { %v300_v3 = vsub.f32 %v292_v46, %v298_v2 }
 0x1b3   :  { %v1192_v51 = vpop.eup %1191  ;;  %v303_v4 = vmul.f32 1.442695, %v300_v3 }
 0x1b4   :  { %v305_v52 = vsel %vm232_vm1, %v1192_v51, 0.0 }
 0x1b5   :  { %306 = vadd.xlane.f32.xlu2 %v305_v52 }
 0x1bf   :  { %391 = vrot.lane.b32.xlu1 %v1573_v27, %s1367_s6 }
 0x219   :  { %v423_v55 = vpop.xlane.xlu1 %422 }
 0x21a   :  { %v427_v56 = vsub.f32 %v419_v42, %v423_v55 }
 0x21c   :  { %v429_v57 = vmul.f32 1.442695, %v427_v56 }
 0x21e   :  { %1193 = vpow2.f32 %v429_v57  ;;  %v230_v57 = vld [vmem:[#allocation7 + $0x10] sm:$0xff] }
 0x21f   :  { %710 = vmatpush.msrb.mxu1 %v230_v57 }
 0x224   :  { %v1194_v58 = vpop.eup %1193 }
 0x225   :  { %v433_v59 = vsel %vm232_vm1, %v1194_v58, 0.0 }
 0x226   :  { %434 = vadd.xlane.f32.xlu2 %v433_v59 }
 0x228   :  { %v307_v60 = vpop.xlane.xlu2 %306 }
 0x229   :  { %1195 = vrcp.f32 %v307_v60 }
 0x22a   :  { %1197 = vpow2.f32 %v303_v4 }
 0x22f   :  { %v1196_v61 = vpop.eup %1195 }
 0x230   :  { %v313_v62 = vmul.f32 %v1196_v61, %v1192_v51  ;;  %v1198_v5 = vpop.eup %1197 }
 0x231   :  { %v392_v0 = vpop.permute.xlu1 %391  ;;  %v308_v6 = vsel %vm232_vm1, %v1198_v5, 0.0 }
 0x232   :  { %1128 = vmatmul.msk.f32.vlgmr.msra.gmra.mxu3 %vm232_vm1, %v313_v62  ;;  %1132 = vmatpush.xpose.msk.msra.mxu2 %vm232_vm1, %v392_v0 }
 0x233   :  { %1140 = vmatpush.xpose.msk.msra.mxu3 %vm232_vm1, %v558_v63 }
 0x236   :  { %547 = vmatpush.msrb.mxu2 %v228_v8 }
 0x23e   :  { %389 = vrot.lane.b32.xlu2 %v1557_v21, %s1367_s6 }
 0x267   :  { %309 = vadd.xlane.f32.xlu2 %v308_v6 }
 0x299   :  { %v435_v10 = vpop.xlane.xlu2 %434 }
 0x29a   :  { %1199 = vrcp.f32 %v435_v10 }
 0x2a0   :  { %v1200_v11 = vpop.eup %1199 }
 0x2a1   :  { %v441_v12 = vmul.f32 %v1200_v11, %v1194_v58  ;;  %v390_v13 = vpop.permute.xlu2 %389 }
 0x2a2   :  { %1133 = vmatmul.msk.f32.vlgmr.msra.gmra.mxu2 %vm232_vm1, %v390_v13 }
 0x2a3   :  { %1134 = vmatmul.msk.f32.vlgmr.msrb.gmra.mxu3 %vm232_vm1, %v441_v12 }
 0x2ab   :  { %1141 = vmatmul.msk.f32.vlgmr.msra.gmra.mxu3 %vm232_vm1, %v556_v1 }
 0x2b5   :  { %v335_v14 = vpop.f32.mrf.mxu3 }
 0x2b6   :  { %1138 = vmatmul.msk.f32.vlgmr.msrb.gmra.mxu2 %vm232_vm1, %v335_v14 }
 0x2da   :  { %v310_v15 = vpop.xlane.xlu2 %309 }
 0x2db   :  { %1201 = vrcp.f32 %v310_v15 }
 0x2e1   :  { %v1202_v16 = vpop.eup %1201 }
 0x2e2   :  { %v314_v18 = vmul.f32 %v1202_v16, %v1198_v5 }
 0x2e4   :  { %1129 = vmatmul.msk.f32.vlgmr.msrb.gmra.mxu0 %vm232_vm1, %v314_v18 }
 0x325   :  { %v414_v22 = vpop.f32.mrf.mxu2 }
 0x326   :  { %v418_v23 = vmul.f32 0.35355338, %v414_v22  ;;  %v467_v25 = vpop.f32.mrf.mxu3 }
 0x327   :  { %1136 = vmatmul.msk.f32.vlgmr.msra.gmra.mxu1 %vm232_vm1, %v467_v25 }
 0x328   :  { %v420_v26 = vadd.f32 %v418_v23, %v1585_v41 }
 0x32a   :  { %v424_v28 = vsel %vm232_vm1, %v420_v26, -inf }
 0x32b   :  { %425 = vmax.xlane.f32.xlu1 %v424_v28 }
 0x32e   :  { %v580_v29 = vpop.f32.mrf.mxu3 }
 0x32f   :  { %v611_v30 = vmul.f32 0.35355338, %v580_v29 }
 0x331   :  { %v613_v31 = vadd.f32 %v611_v30, %v1581_v33 }
 0x333   :  { %v615_v32 = vsel %vm232_vm1, %v613_v31, -inf }
 0x334   :  { %616 = vmax.xlane.f32.xlu2 %v615_v32 }
 0x339   :  { %v1644_v63 = vpop.f32.mrf.mxu2 }
 0x344   :  { %585 = vrot.lane.b32.xlu1 %v1573_v27, %s1368_s20 }
 0x34c   :  { %471 = vrot.lane.b32.xlu2 %v1594_v54, %s1367_s6 }
 0x354   :  { %583 = vrot.lane.b32.xlu2 %v1557_v21, %s1368_s20 }
 0x35c   :  { %748 = vrot.lane.b32.xlu2 %v1557_v21, %s1370_s7 }
 0x361   :  { %v358_v34 = vpop.f32.mrf.mxu0 }
 0x362   :  { %1139 = vmatmul.msk.f32.gmra.mxu2 %vm232_vm1, %v358_v34 }
 0x39e   :  { %v426_v35 = vpop.xlane.xlu1 %425 }
 0x39f   :  { %v428_v36 = vsub.f32 %v420_v26, %v426_v35 }
 0x3a1   :  { %v431_v37 = vmul.f32 1.442695, %v428_v36 }
 0x3a3   :  { %1203 = vpow2.f32 %v431_v37 }
 0x3a7   :  { %v617_v38 = vpop.xlane.xlu2 %616 }
 0x3a8   :  { %v621_v39 = vsub.f32 %v613_v31, %v617_v38  ;;  %v1176_v31 = vpack.i.bf16 %v1594_v54, %v1564_v24 }
 0x3a9   :  { %v1204_v40 = vpop.eup %1203 }
 0x3aa   :  { %v623_v42 = vmul.f32 1.442695, %v621_v39  ;;  %v436_v43 = vsel %vm232_vm1, %v1204_v40, 0.0 }
 0x3ab   :  { %437 = vadd.xlane.f32.xlu0 %v436_v43 }
 0x3ac   :  { %1205 = vpow2.f32 %v623_v42 }
 0x3af   :  { %v472_v44 = vpop.permute.xlu2 %471 }
 0x3b0   :  { %492 = vmatpush.msra.mxu0 %v472_v44 }
 0x3b2   :  { %v1206_v45 = vpop.eup %1205 }
 0x3b3   :  { %v627_v21 = vsel %vm232_vm1, %v1206_v45, 0.0 }
 0x3b4   :  { %628 = vadd.xlane.f32.xlu1 %v627_v21 }
 0x3b6   :  { %v586_v46 = vpop.permute.xlu1 %585 }
 0x3b7   :  { %1142 = vmatpush.xpose.msk.msrb.mxu0 %vm232_vm1, %v586_v46  ;;  %v584_v52 = vpop.permute.xlu2 %583 }
 0x3bf   :  { %637 = vrot.lane.b32.xlu0 %v1564_v24, %s1368_s20  ;;  %v749_v56 = vpop.permute.xlu2 %748 }
 0x3c7   :  { %722 = vrot.lane.b32.xlu0 %v1547_v17, %s1370_s7 }
 0x3cd   :  { %750 = vrot.lane.b32.xlu1 %v1573_v27, %s1370_s7 }
 0x3cf   :  { %720 = vrot.lane.b32.xlu0 %v1549_v19, %s1370_s7 }
 0x3e5   :  { %v1647_v1 = vpop.f32.mrf.mxu2 }
 0x41e   :  { %v438_v47 = vpop.xlane.xlu0 %437 }
 0x41f   :  { %1207 = vrcp.f32 %v438_v47  ;;  %v520_v47 = vpop.f32.mrf.mxu1 }
 0x425   :  { %v1208_v48 = vpop.eup %1207 }
 0x426   :  { %v442_v49 = vmul.f32 %v1208_v48, %v1204_v40 }
 0x427   :  { %v629_v50 = vpop.xlane.xlu1 %628 }
 0x428   :  { %1209 = vrcp.f32 %v629_v50  ;;  %1135 = vmatmul.msk.f32.vlgmr.msra.gmra.mxu0 %vm232_vm1, %v442_v49  ;;  %v550_v50 = vadd.f32 %v1644_v63, %v520_v47 }
 0x42e   :  { %v1210_v51 = vpop.eup %1209 }
 0x42f   :  { %v635_v53 = vmul.f32 %v1210_v51, %v1206_v45 }
 0x430   :  { %1143 = vmatmul.msk.f32.vlgmr.msrb.gmra.mxu0 %vm232_vm1, %v584_v52  ;;  %v1184_v52 = vld [vmem:[%s1753_s9] ss:$0 sm:$0xff] }
 0x431   :  { %v638_v17 = vpop.permute.xlu0 %637 }
 0x432   :  { %658 = vmatpush.msrb.mxu3 %v638_v17 }
 0x433   :  { %1144 = vmatmul.msk.f32.vlgmr.msrb.gmra.mxu3 %vm232_vm1, %v635_v53 }
 0x439   :  { %v723_v27 = vpop.permute.xlu0 %722 }
 0x43a   :  { %1148 = vmatpush.xpose.msk.msra.mxu2 %vm232_vm1, %v723_v27 }
 0x43f   :  { %v751_v19 = vpop.permute.xlu1 %750 }
 0x440   :  { %1150 = vmatpush.xpose.msk.msra.mxu3 %vm232_vm1, %v751_v19 }
 0x441   :  { %v721_v55 = vpop.permute.xlu0 %720 }
 0x442   :  { %1149 = vmatmul.msk.f32.vlgmr.msra.gmra.mxu2 %vm232_vm1, %v721_v55 }
 0x443   :  { %1151 = vmatmul.msk.f32.vlgmr.msra.gmra.mxu3 %vm232_vm1, %v749_v56 }
 0x4a5   :  { %v494_v58 = vpop.f32.mrf.mxu0 }
 0x4a6   :  { %1137 = vmatmul.msk.f32.gmra.mxu1 %vm232_vm1, %v494_v58 }
 0x4ad   :  { %v608_v59 = vpop.f32.mrf.mxu0 }
 0x4ae   :  { %v612_v60 = vmul.f32 0.35355338, %v608_v59 }
 0x4b0   :  { %v614_v61 = vadd.f32 %v612_v60, %v1585_v41 }
 0x4b2   :  { %v618_v62 = vsel %vm232_vm1, %v614_v61, -inf }
 0x4b3   :  { %619 = vmax.xlane.f32.xlu1 %v618_v62 }
 0x4b6   :  { %v660_v0 = vpop.f32.mrf.mxu3 }
 0x4b7   :  { %1146 = vmatmul.msk.f32.vlgmr.msrb.gmra.mxu1 %vm232_vm1, %v660_v0  ;;  %v1371_v0 = vmov 32.0  }
 0x4c5   :  { %v745_v2 = vpop.f32.mrf.mxu2 }
 0x4c6   :  { %v776_v3 = vmul.f32 0.35355338, %v745_v2  ;;  %v773_v4 = vpop.f32.mrf.mxu3 }
 0x4c7   :  { %v777_v5 = vmul.f32 0.35355338, %v773_v4 }
 0x4c8   :  { %v778_v6 = vadd.f32 %v776_v3, %v1581_v33 }
 0x4c9   :  { %v779_v8 = vadd.f32 %v777_v5, %v1585_v41 }
 0x4ca   :  { %v780_v10 = vsel %vm232_vm1, %v778_v6, -inf }
 0x4cb   :  { %781 = vmax.xlane.f32.xlu0 %v780_v10  ;;  %v783_v11 = vsel %vm232_vm1, %v779_v8, -inf }
 0x4cc   :  { %784 = vmax.xlane.f32.xlu2 %v783_v11 }
 0x4e4   :  { %663 = vrot.lane.b32.xlu2 %v1594_v54, %s1368_s20  ;;  %v231_v54 = vld [vmem:[#allocation7 + $0x18] sm:$0xff] }
 0x4e5   :  { %875 = vmatpush.msrb.mxu3 %v231_v54 }
 0x523   :  { %v523_v48 = vpop.f32.mrf.mxu1 }
 0x524   :  { %v553_v55 = vadd.f32 %v1647_v1, %v523_v48 }
 0x526   :  { %v620_v12 = vpop.xlane.xlu1 %619 }
 0x527   :  { %v622_v13 = vsub.f32 %v614_v61, %v620_v12 }
 0x529   :  { %v625_v14 = vmul.f32 1.442695, %v622_v13 }
 0x52b   :  { %1211 = vpow2.f32 %v625_v14 }
 0x531   :  { %v1212_v15 = vpop.eup %1211 }
 0x532   :  { %v630_v16 = vsel %vm232_vm1, %v1212_v15, 0.0 }
 0x533   :  { %631 = vadd.xlane.f32.xlu1 %v630_v16 }
 0x534   :  { %v712_v49 = vpop.f32.mrf.mxu1 }
 0x535   :  { %v718_v51 = vadd.f32 %v712_v49, %v550_v50 }
 0x53e   :  { %v782_v33 = vpop.xlane.xlu0 %781 }
 0x53f   :  { %v786_v18 = vsub.f32 %v778_v6, %v782_v33  ;;  %v785_v41 = vpop.xlane.xlu2 %784  ;;  %v959_v33 = vld [vmem:[#allocation8 + $0x18] sm:$0xff] }
 0x540   :  { %v787_v20 = vsub.f32 %v779_v8, %v785_v41  ;;  %v957_v41 = vld [vmem:[#allocation8 + $0x8] sm:$0xff] }
 0x541   :  { %v788_v22 = vmul.f32 1.442695, %v786_v18  ;;  %v958_v18 = vld [vmem:[#allocation8 + $0x10] sm:$0xff] }
 0x542   :  { %v790_v23 = vmul.f32 1.442695, %v787_v20  ;;  %v956_v20 = vld [vmem:[#allocation8] sm:$0xff] }
 0x543   :  { %1213 = vpow2.f32 %v788_v22 }
 0x544   :  { %1215 = vpow2.f32 %v790_v23 }
 0x547   :  { %v664_v25 = vpop.permute.xlu2 %663 }
 0x548   :  { %684 = vmatpush.msra.mxu0 %v664_v25 }
 0x549   :  { %v1214_v26 = vpop.eup %1213 }
 0x54a   :  { %v1216_v28 = vpop.eup %1215  ;;  %v792_v29 = vsel %vm232_vm1, %v1214_v26, 0.0 }
 0x54b   :  { %793 = vadd.xlane.f32.xlu0 %v792_v29  ;;  %v795_v30 = vsel %vm232_vm1, %v1216_v28, 0.0  ;;  %v1000_v29 = vld [vmem:[%s1758_s14 + $0x28] sm:$0xff] }
 0x54c   :  { %796 = vadd.xlane.f32.xlu1 %v795_v30 }
 0x55f   :  { %1177 = vrot.lane.b32.xlu0 %v1176_v31, %s1370_s7 }
 0x5a6   :  { %v632_v32 = vpop.xlane.xlu1 %631 }
 0x5a7   :  { %1217 = vrcp.f32 %v632_v32  ;;  %v999_v32 = vld [vmem:[%s1758_s14 + $0x20] sm:$0xff] }
 0x5ad   :  { %v1218_v34 = vpop.eup %1217 }
 0x5ae   :  { %v636_v35 = vmul.f32 %v1218_v34, %v1212_v15 }
 0x5b0   :  { %1145 = vmatmul.msk.f32.vlgmr.msra.gmra.mxu0 %vm232_vm1, %v636_v35 }
 0x5be   :  { %v794_v36 = vpop.xlane.xlu0 %793 }
 0x5bf   :  { %v797_v37 = vpop.xlane.xlu1 %796  ;;  %1219 = vrcp.f32 %v794_v36  ;;  %v998_v36 = vld [vmem:[%s1758_s14 + $0x18] sm:$0xff] }
 0x5c0   :  { %1221 = vrcp.f32 %v797_v37 }
 0x5c1   :  { %1223 = vrcp.f32 %v1371_v0  ;;  %v1188_v0 = vld [vmem:[%s1759_s15] ss:$0 sm:$0xff] }
 0x5c5   :  { %v1220_v38 = vpop.eup %1219 }
 0x5c6   :  { %v1222_v39 = vpop.eup %1221  ;;  %v800_v44 = vmul.f32 %v1220_v38, %v1214_v26  ;;  %v1002_v26 = vld [vmem:[%s1758_s14 + $0x38] sm:$0xff] }
 0x5c7   :  { %v801_v45 = vmul.f32 %v1222_v39, %v1216_v28  ;;  %v1224_v2 = vpop.eup %1223  ;;  %v1001_v28 = vld [vmem:[%s1758_s14 + $0x30] sm:$0xff]  ;;  %1022 = vmatpush.msra.mxu1 %v1002_v26 }
 0x5c8   :  { %v902_v3 = vmul.f32 32.0, %v1224_v2  ;;  %vm906_vm3 = vweird.f32 %v1224_v2 }
 0x5c9   :  { %1023 = vmatpush.msra.mxu1 %v1001_v28 }
 0x5ca   :  { %v903_v4 = vsub.f32 1.0, %v902_v3 }
 0x5cb   :  { %1024 = vmatpush.msra.mxu1 %v1000_v29 }
 0x5cc   :  { %v904_v1 = vmul.f32 %v1224_v2, %v903_v4 }
 0x5cd   :  { %1025 = vmatpush.msra.mxu1 %v999_v32 }
 0x5ce   :  { %v905_v5 = vadd.f32 %v1224_v2, %v904_v1 }
 0x5cf   :  { %1026 = vmatpush.msra.mxu1 %v998_v36 }
 0x5d1   :  { %v1178_v40 = vpop.permute.xlu0 %1177 }
 0x5d2   :  { %v1180_v42 = vunpack.i.h.bf16 %v1178_v40  ;;  %v1179_v43 = vunpack.i.l.bf16 %v1178_v40 }
 0x5d4   :  { %823 = vmatpush.msrb.mxu0 %v1179_v43  ;;  %849 = vmatpush.msrb.mxu2 %v1180_v42 }
 0x5d5   :  { %1152 = vmatmul.msk.f32.vlgmr.msrb.gmra.mxu0 %vm232_vm1, %v800_v44  ;;  %1153 = vmatmul.msk.f32.vlgmr.msrb.gmra.mxu2 %vm232_vm1, %v801_v45  ;;  %v1185_v45 = vld [vmem:[%s1754_s10] ss:$0 sm:$0xff] }
 0x5d6   :  { %982 = vmatpush.msra.mxu0 %v959_v33 }
 0x5d8   :  { %983 = vmatpush.msra.mxu0 %v958_v18 }
 0x5da   :  { %984 = vmatpush.msra.mxu0 %v957_v41 }
 0x5dc   :  { %985 = vmatpush.msra.mxu0 %v956_v20 }
 0x62d   :  { %v686_v24 = vpop.f32.mrf.mxu0 }
 0x62e   :  { %1147 = vmatmul.msk.f32.gmra.mxu1 %vm232_vm1, %v686_v24 }
 0x652   :  { %v825_v21 = vpop.f32.mrf.mxu0 }
 0x653   :  { %1154 = vmatmul.msk.f32.vlgmr.msrb.gmra.mxu3 %vm232_vm1, %v825_v21 }
 0x658   :  { %v851_v46 = vpop.f32.mrf.mxu2 }
 0x65b   :  { %1155 = vmatmul.msk.f32.gmra.mxu3 %vm232_vm1, %v851_v46  ;;  %v1186_v46 = vld [vmem:[%s1755_s11] ss:$0 sm:$0xff] }
 0x6ab   :  { %v715_v19 = vpop.f32.mrf.mxu1 }
 0x6ac   :  { %v719_v57 = vadd.f32 %v715_v19, %v553_v55  ;;  %v997_v19 = vld [vmem:[%s1758_s14 + $0x10] sm:$0xff]  ;;  %v996_v55 = vld [vmem:[%s1758_s14 + $0x8] sm:$0xff] }
 0x6ad   :  { %1027 = vmatpush.msra.mxu1 %v997_v19 }
 0x6af   :  { %1028 = vmatpush.msra.mxu1 %v996_v55 }
 0x6d6   :  { %v877_v53 = vpop.f32.mrf.mxu3 }
 0x6d7   :  { %v883_v17 = vadd.f32 %v877_v53, %v718_v51 }
 0x6d9   :  { %v889_v27 = vadd.f32 %v1184_v52, %v883_v17 }
 0x6db   :  { %v891_v56 = vadd.f32 %v889_v27, %v1510_v7  ;;  %v1676_v7 = vsel %vm906_vm3, %v1224_v2, %v905_v5 }
 0x6dd   :  { %v895_v58 = vsel %vm131_vm0, %v891_v56, 0.0 }
 0x6de   :  { %896 = vadd.xlane.f32.xlu1 %v895_v58  ;;  %v880_v59 = vpop.f32.mrf.mxu3 }
 0x6df   :  { %v884_v60 = vadd.f32 %v880_v59, %v719_v57  ;;  %v1187_v57 = vld [vmem:[%s1757_s13] ss:$0 sm:$0xff] }
 0x6e1   :  { %v890_v61 = vadd.f32 %v1184_v52, %v884_v60 }
 0x6e3   :  { %v892_v62 = vadd.f32 %v890_v61, %v1515_v9 }
 0x6e5   :  { %v898_v63 = vsel %vm131_vm0, %v892_v62, 0.0 }
 0x6e6   :  { %899 = vadd.xlane.f32.xlu1 %v898_v63 }
 0x751   :  { %v897_v6 = vpop.xlane.xlu1 %896 }
 0x752   :  { %v908_v8 = vmul.f32 %v1676_v7, %v897_v6 }
 0x754   :  { %v910_v10 = vsub.f32 %v891_v56, %v908_v8  ;;  %v995_v56 = vld [vmem:[%s1758_s14] sm:$0xff] }
 0x755   :  { %1029 = vmatpush.msra.mxu1 %v995_v56 }
 0x756   :  { %v912_v11 = vmul.f32 %v910_v10, %v910_v10 }
 0x758   :  { %v914_v9 = vsel %vm131_vm0, %v912_v11, 0.0 }
 0x759   :  { %915 = vadd.xlane.f32.xlu2 %v914_v9  ;;  %v900_v12 = vpop.xlane.xlu1 %899 }
 0x75a   :  { %v909_v13 = vmul.f32 %v1676_v7, %v900_v12 }
 0x75c   :  { %v911_v14 = vsub.f32 %v892_v62, %v909_v13 }
 0x75e   :  { %v913_v15 = vmul.f32 %v911_v14, %v911_v14 }
 0x760   :  { %v917_v16 = vsel %vm131_vm0, %v913_v15, 0.0 }
 0x761   :  { %918 = vadd.xlane.f32.xlu0 %v917_v16 }
 0x7cc   :  { %v916_v22 = vpop.xlane.xlu2 %915 }
 0x7cd   :  { %v920_v23 = vmul.f32 %v916_v22, %v1676_v7 }
 0x7cf   :  { %v922_v25 = vadd.f32 1e-12, %v920_v23 }
 0x7d1   :  { %1225 = vrsqrt.f32 %v922_v25  ;;  %vm930_vm5 = vweird.f32 %v922_v25 }
 0x7d4   :  { %v919_v30 = vpop.xlane.xlu0 %918 }
 0x7d5   :  { %v921_v31 = vmul.f32 %v919_v30, %v1676_v7 }
 0x7d7   :  { %v1226_v34 = vpop.eup %1225  ;;  %v923_v35 = vadd.f32 1e-12, %v921_v31 }
 0x7d8   :  { %v925_v37 = vmul.f32 %v1226_v34, %v922_v25  ;;  %vm931_vm4 = vweird.f32 %v1226_v34 }
 0x7d9   :  { %1227 = vrsqrt.f32 %v923_v35  ;;  %vm932_vm6 = vmor %vm930_vm5, %vm931_vm4  ;;  %vm940_vm8 = vweird.f32 %v923_v35 }
 0x7da   :  { %v926_v38 = vmul.f32 %v1226_v34, %v925_v37 }
 0x7dc   :  { %v927_v39 = vmul.f32 0.5, %v926_v38  ;;  %v1189_v38 = vld [vmem:[%s1760_s16] ss:$0 sm:$0xff]  ;;  %s1372_s16 = smov [#allocation10]  }
 0x7dd   :  { %s1101_s22 = sshll.u32 %s1372_s16, 4  ;;  %s1102_s22 = int_to_ptr.vmem [resolvable:$true] %s1101_s22 }
 0x7de   :  { %v928_v40 = vsub.f32 1.5, %v927_v39 }
 0x7df   :  { %v1228_v42 = vpop.eup %1227 }
 0x7e0   :  { %v929_v43 = vmul.f32 %v1226_v34, %v928_v40  ;;  %v935_v44 = vmul.f32 %v1228_v42, %v923_v35  ;;  %vm941_vm7 = vweird.f32 %v1228_v42 }
 0x7e1   :  { %vm942_vm9 = vmor %vm940_vm8, %vm941_vm7 }
 0x7e2   :  { %v933_v24 = vsel %vm932_vm6, %v1226_v34, %v929_v43  ;;  %v936_v54 = vmul.f32 %v1228_v42, %v935_v44 }
 0x7e3   :  { %v944_v21 = vmul.f32 %v933_v24, %v910_v10 }
 0x7e4   :  { %v937_v47 = vmul.f32 0.5, %v936_v54 }
 0x7e5   :  { %v949_v48 = vmul.f32 %v1185_v45, %v944_v21 }
 0x7e6   :  { %v938_v49 = vsub.f32 1.5, %v937_v47 }
 0x7e7   :  { %v954_v50 = vadd.f32 %v1186_v46, %v949_v48 }
 0x7e8   :  { %v939_v51 = vmul.f32 %v1228_v42, %v938_v49 }
 0x7e9   :  { %1156 = vmatmul.msk.f32.vlgmr.msra.gmra.mxu0 %vm131_vm0, %v954_v50 }
 0x7ea   :  { %v943_v52 = vsel %vm942_vm9, %v1228_v42, %v939_v51  ;;  %v1190_v42 = vld [vmem:[%s1761_s17] ss:$0 sm:$0xff] }
 0x7eb   :  { %v945_v53 = vmul.f32 %v943_v52, %v911_v14 }
 0x7ed   :  { %v950_v17 = vmul.f32 %v1185_v45, %v945_v53 }
 0x7ef   :  { %v955_v27 = vadd.f32 %v1186_v46, %v950_v17 }
 0x7f1   :  { %1157 = vmatmul.msk.f32.gmra.mxu0 %vm131_vm0, %v955_v27 }
 0x866   :  { %v987_v58 = vpop.f32.mrf.mxu0 }
 0x867   :  { %v988_v59 = vadd.f32 %v1187_v57, %v987_v58 }
 0x869   :  { %v993_v60 = vmax.f32 %v988_v59, 0.0 }
 0x86b   :  { %1158 = vmatmul.msk.f32.vlgmr.msra.gmra.mxu1 %vm1007_vm10, %v993_v60 }
 0x86e   :  { %v990_v61 = vpop.f32.mrf.mxu0 }
 0x86f   :  { %v991_v62 = vadd.f32 %v1187_v57, %v990_v61 }
 0x871   :  { %v994_v63 = vmax.f32 %v991_v62, 0.0 }
 0x873   :  { %1159 = vmatmul.msk.f32.gmra.mxu1 %vm1007_vm10, %v994_v63 }
 0x8e8   :  { %v1031_v2 = vpop.f32.mrf.mxu1 }
 0x8e9   :  { %v1032_v3 = vadd.f32 %v1188_v0, %v1031_v2 }
 0x8eb   :  { %v1037_v4 = vadd.f32 %v1032_v3, %v954_v50 }
 0x8ed   :  { %v1041_v1 = vsel %vm131_vm0, %v1037_v4, 0.0 }
 0x8ee   :  { %1042 = vadd.xlane.f32.xlu1 %v1041_v1 }
 0x8f0   :  { %v1034_v5 = vpop.f32.mrf.mxu1 }
 0x8f1   :  { %v1035_v6 = vadd.f32 %v1188_v0, %v1034_v5 }
 0x8f3   :  { %v1038_v8 = vadd.f32 %v1035_v6, %v955_v27 }
 0x8f5   :  { %v1044_v10 = vsel %vm131_vm0, %v1038_v8, 0.0 }
 0x8f6   :  { %1045 = vadd.xlane.f32.xlu1 %v1044_v10 }
 0x961   :  { %v1043_v11 = vpop.xlane.xlu1 %1042 }
 0x962   :  { %v1047_v9 = vmul.f32 %v1043_v11, %v1676_v7 }
 0x964   :  { %v1049_v12 = vsub.f32 %v1037_v4, %v1047_v9 }
 0x966   :  { %v1051_v13 = vmul.f32 %v1049_v12, %v1049_v12 }
 0x968   :  { %v1053_v14 = vsel %vm131_vm0, %v1051_v13, 0.0 }
 0x969   :  { %1054 = vadd.xlane.f32.xlu1 %v1053_v14  ;;  %v1046_v15 = vpop.xlane.xlu1 %1045 }
 0x96a   :  { %v1048_v16 = vmul.f32 %v1046_v15, %v1676_v7 }
 0x96c   :  { %v1050_v33 = vsub.f32 %v1038_v8, %v1048_v16 }
 0x96e   :  { %v1052_v18 = vmul.f32 %v1050_v33, %v1050_v33 }
 0x970   :  { %v1056_v41 = vsel %vm131_vm0, %v1052_v18, 0.0 }
 0x971   :  { %1057 = vadd.xlane.f32.xlu1 %v1056_v41 }
 0x9dc   :  { %v1055_v20 = vpop.xlane.xlu1 %1054 }
 0x9dd   :  { %v1059_v22 = vmul.f32 %v1055_v20, %v1676_v7 }
 0x9df   :  { %v1061_v23 = vadd.f32 1e-12, %v1059_v22 }
 0x9e1   :  { %1229 = vrsqrt.f32 %v1061_v23  ;;  %vm1069_vm12 = vweird.f32 %v1061_v23 }
 0x9e4   :  { %v1058_v25 = vpop.xlane.xlu1 %1057 }
 0x9e5   :  { %v1060_v26 = vmul.f32 %v1058_v25, %v1676_v7 }
 0x9e7   :  { %v1230_v28 = vpop.eup %1229  ;;  %v1062_v29 = vadd.f32 1e-12, %v1060_v26 }
 0x9e8   :  { %v1064_v30 = vmul.f32 %v1230_v28, %v1061_v23  ;;  %vm1070_vm11 = vweird.f32 %v1230_v28 }
 0x9e9   :  { %1231 = vrsqrt.f32 %v1062_v29  ;;  %vm1071_vm13 = vmor %vm1069_vm12, %vm1070_vm11  ;;  %vm1079_vm15 = vweird.f32 %v1062_v29 }
 0x9ea   :  { %v1065_v31 = vmul.f32 %v1230_v28, %v1064_v30 }
 0x9ec   :  { %v1066_v32 = vmul.f32 0.5, %v1065_v31 }
 0x9ee   :  { %v1067_v34 = vsub.f32 1.5, %v1066_v32 }
 0x9ef   :  { %v1232_v35 = vpop.eup %1231 }
 0x9f0   :  { %v1068_v36 = vmul.f32 %v1230_v28, %v1067_v34  ;;  %v1074_v37 = vmul.f32 %v1232_v35, %v1062_v29  ;;  %vm1080_vm14 = vweird.f32 %v1232_v35 }
 0x9f1   :  { %vm1081_vm1 = vmor %vm1079_vm15, %vm1080_vm14 }
 0x9f2   :  { %v1072_v39 = vsel %vm1071_vm13, %v1230_v28, %v1068_v36  ;;  %v1075_v40 = vmul.f32 %v1232_v35, %v1074_v37 }
 0x9f3   :  { %v1083_v7 = vmul.f32 %v1072_v39, %v1049_v12 }
 0x9f4   :  { %v1076_v43 = vmul.f32 0.5, %v1075_v40 }
 0x9f5   :  { %v1088_v44 = vmul.f32 %v1189_v38, %v1083_v7 }
 0x9f6   :  { %v1077_v45 = vsub.f32 1.5, %v1076_v43 }
 0x9f7   :  { %v1093_v24 = vadd.f32 %v1190_v42, %v1088_v44 }
 0x9f8   :  { %v1078_v54 = vmul.f32 %v1232_v35, %v1077_v45 }
 0x9f9   :  { %1095 = vst.msk [vmem:[#allocation10] sm:$0xff] %vm131_vm0, %v1093_v24 }
 0x9fa   :  { %v1082_v21 = vsel %vm1081_vm1, %v1232_v35, %v1078_v54 }
 0x9fb   :  { %v1084_v46 = vmul.f32 %v1082_v21, %v1050_v33 }
 0x9fd   :  { %v1089_v47 = vmul.f32 %v1189_v38, %v1084_v46 }
 0x9ff   :  { %v1094_v48 = vadd.f32 %v1190_v42, %v1089_v47 }
 0xa01   :  { %1096 = vst.msk [vmem:[#allocation10 + $0x8] sm:$0xff] %vm131_vm0, %v1094_v48 }
 0xa02   :  { %1109 = dma.vmem_to_hbm [thread:$0]  %s1102_s22, 256, %s1104_s23, [#allocation4], %s1363_s24, %s1363_s24, %s1364_s25  }
 0xa03   :  { %1359 = dma.done.wait [#allocation4], 256  }
 0xa04   :  { %1360 = vsyncadd [#allocation4], 4294967040 }
 0xa05   :  { %1114 = vsyncpa [#allocation3], 1 }
 0xa06   :  { %1115 = vsyncpa [#allocation6], 1 }
 0xa07   :  { %1116 = vsyncpa [#allocation9], 1 }
 0xa08   :  { %1117 = vsyncpa [#allocation4], 1 }

</bundles_post_ra>
